<compile_context>
chip_gen: v7x
topology: tpu7x:2x2x1
jax: 0.10.0
libtpu: 0.0.40
codegen_flags: <defaults>
</compile_context>

<pallas_src>
import functools

import jax
import jax.numpy as jnp
from jax import lax
from jax.experimental import pallas as pl
from jax.experimental.pallas import tpu as pltpu


_MIB = 1024 * 1024
_VMEM_HEADROOM = 4 * _MIB      # allowance for compiler-internal scratch
_ROW_GROUP = 8                 # gathered rows are merged / stored in groups of 8 sublanes


def _recon_loss_kernel(
    idx_ref,      # SMEM (B, S) int32 — precomputed (wrapped + clamped) gather row indices
    x_ref,        # VMEM (1, S, TV) block of y_pred[b, :, j*TV:(j+1)*TV]
    out_ref,      # VMEM (S, V) f32 — full output, resident across the whole grid
    m_ref,        # VMEM (S, 1) f32 — running max of gathered rows (current batch element)
    l_ref,        # VMEM (S, 1) f32 — running sum of exp
    c_ref,        # VMEM (S, 1) f32 — sum over b of logsumexp of gathered rows
    *, seq_len, batch, n_vt, tile_v, inv_b):
  b = pl.program_id(0)          # batch element (outer; accumulation axis)
  j = pl.program_id(1)          # vocab tile   (inner; online-lse streaming axis)

  # ---- one-time init of the resident accumulators --------------------------------
  @pl.when(jnp.logical_and(b == 0, j == 0))
  def _():
    out_ref[...] = jnp.zeros_like(out_ref)
    c_ref[...] = jnp.zeros_like(c_ref)

  # ---- per-batch-element init of the online-lse state ----------------------------
  @pl.when(j == 0)
  def _():
    m_ref[...] = jnp.full_like(m_ref, -jnp.inf)
    l_ref[...] = jnp.zeros_like(l_ref)

  def process_rows(s0, nrows):
    # Gather `nrows` rows (dense, in registers) whose output rows start at s0.
    rows = []
    for r in range(nrows):                         # static unroll within the group
      i = idx_ref[b, s0 + r]                       # 1 SMEM scalar read per row
      rows.append(x_ref[0, pl.ds(i, 1), :])        # (1, TV) dynamic-sublane load
    blk = rows[0] if nrows == 1 else jnp.concatenate(rows, axis=0)
    blk = blk.astype(jnp.float32)                  # (nrows, TV) f32

    rs = pl.ds(s0, nrows)

    # Online logsumexp over vocab tiles of the gathered rows.
    # (Note: an all -inf logits tile would propagate NaN through exp(m_prev - m_new);
    # not guarded, matching the reference semantics for finite logits.)
    m_prev = m_ref[rs, :]
    m_new = jnp.maximum(m_prev, jnp.max(blk, axis=-1, keepdims=True))
    l_ref[rs, :] = (l_ref[rs, :] * jnp.exp(m_prev - m_new)
                    + jnp.sum(jnp.exp(blk - m_new), axis=-1, keepdims=True))
    m_ref[rs, :] = m_new

    # Accumulate raw gathered logits into the resident (S, V) output: dense (nrows, TV)
    # read-modify-write.  The vocab-tile column is chosen with a statically unrolled
    # pl.when dispatch so all lane offsets stay static and tile-aligned.
    if n_vt == 1:
      out_ref[rs, :] = out_ref[rs, :] + blk
    else:
      for jj in range(n_vt):                       # only the branch with jj == j runs
        @pl.when(j == jj)
        def _(jj=jj):
          cs = slice(jj * tile_v, (jj + 1) * tile_v)
          out_ref[rs, cs] = out_ref[rs, cs] + blk

  n_groups = seq_len // _ROW_GROUP
  rem = seq_len - n_groups * _ROW_GROUP
  if n_groups > 0:
    def group_body(g, carry):
      process_rows(pl.multiple_of(g * _ROW_GROUP, _ROW_GROUP), _ROW_GROUP)
      return carry
    lax.fori_loop(0, n_groups, group_body, 0, unroll=(n_groups <= 2))
  if rem > 0:
    process_rows(n_groups * _ROW_GROUP, rem)       # static (< 8 row) tail

  # ---- end of this batch element: bank its per-row logsumexp ----------------------
  @pl.when(j == n_vt - 1)
  def _():
    c_ref[...] += m_ref[...] + jnp.log(l_ref[...])

  # ---- very last grid step: out = (C - A) / B  (single full-shape finalize) -------
  @pl.when(jnp.logical_and(b == batch - 1, j == n_vt - 1))
  def _():
    out_ref[...] = (c_ref[...] - out_ref[...]) * inv_b


def _vmem_cap_bytes():
  """Generation-aware scoped-VMEM cap (~85% of physical per-core VMEM)."""
  phys = None
  try:
    phys = getattr(pltpu.get_tpu_info(), "vmem_capacity_bytes", None)
  except Exception:
    phys = None
  if not phys or phys <= 0:
    phys = 64 * _MIB               # conservative fallback: v7x has the smallest VMEM
  return int(phys * 0.85)


def _vmem_needed_bytes(s, v, tv, in_itemsize):
  pad8 = ((s + 7) // 8) * 8
  bytes_in = 2 * s * tv * in_itemsize   # double-buffered (1, S, TV) y_pred tile
  bytes_out = 2 * s * v * 4             # resident (S, V) f32 accumulator (2 buffers)
  bytes_scr = 3 * pad8 * 128 * 4        # three (S, 1) f32 scratches (lane-padded to 128)
  return bytes_in + bytes_out + bytes_scr


def _candidate_tiles(v):
  """Candidate vocab tile sizes: V itself plus every multiple-of-128 divisor, descending."""
  cands = {v}
  if v % 128 == 0:
    t = 128
    while t <= v:
      if v % t == 0:
        cands.add(t)
      t += 128
  return sorted(cands, reverse=True)


def classifying_reconstruction_loss(y_pred, y_true, pad_id=0, *, tv=None):
  """y_pred: (B, S, V) float32/bfloat16 logits, y_true: (B, S) integer ids in [0, S).
  Returns (S, V) float32, matching the PyTorch forward() as written (pad_id is unused
  there as well)."""
  del pad_id
  B, S, V = y_pred.shape
  itemsize = jnp.dtype(y_pred.dtype).itemsize

  # torch row-gather index: y_true - 1, with -1 wrapping to S-1.  The clamp guards against
  # out-of-range ids (Pallas performs no bounds check on VMEM reads).  Tiny (B, S) int op,
  # scalar-prefetched into SMEM.
  yt = y_true.astype(jnp.int32)
  row_idx = jnp.clip(jnp.where(yt == 0, S - 1, yt - 1), 0, S - 1).astype(jnp.int32)

  cap = _vmem_cap_bytes()
  if tv is None:
    cands = _candidate_tiles(V)
    tv = cands[-1]                                  # smallest tile as a fallback
    for cand in cands:                              # prefer the largest tile that fits
      if _vmem_needed_bytes(S, V, cand, itemsize) + _VMEM_HEADROOM <= cap:
        tv = cand
        break
  if V % tv != 0 or not (tv == V or tv % 128 == 0):
    raise ValueError(f"tv={tv} must divide V={V} and be a multiple of 128 (or == V)")
  nj = V // tv

  needed = _vmem_needed_bytes(S, V, tv, itemsize) + _VMEM_HEADROOM
  vmem_limit = int(min(max(needed, 32 * _MIB), 128 * _MIB))

  kernel = functools.partial(
      _recon_loss_kernel, seq_len=S, batch=B, n_vt=nj, tile_v=tv, inv_b=1.0 / B)

  cost = pl.CostEstimate(
      flops=4 * B * S * V,
      transcendentals=B * S * V,
      bytes_accessed=B * S * V * itemsize + S * V * 4 + B * S * 4,
  )

  return pl.pallas_call(
      kernel,
      out_shape=jax.ShapeDtypeStruct((S, V), jnp.float32),
      grid_spec=pltpu.PrefetchScalarGridSpec(
          num_scalar_prefetch=1,                    # row_idx -> SMEM
          grid=(B, nj),                             # batch outer, vocab tile inner
          in_specs=[
              pl.BlockSpec((1, S, tv), lambda b, j, idx: (b, 0, j)),
          ],
          # Whole (S, V) output resident in VMEM for the entire grid (accumulator over b);
          # written back to HBM exactly once, lane-dense, no wrapper transpose needed.
          out_specs=pl.BlockSpec((S, V), lambda b, j, idx: (0, 0)),
          scratch_shapes=[
              pltpu.VMEM((S, 1), jnp.float32),      # running max
              pltpu.VMEM((S, 1), jnp.float32),      # running sum-exp
              pltpu.VMEM((S, 1), jnp.float32),      # sum_b logsumexp of gathered rows
          ],
      ),
      compiler_params=pltpu.CompilerParams(
          # The resident output is revisited across the whole grid, so no axis may be
          # "parallel" (see the 2-pass TODO above for a v7x megacore variant).
          dimension_semantics=("arbitrary", "arbitrary"),
          vmem_limit_bytes=vmem_limit,
      ),
      cost_estimate=cost,
  )(row_idx, y_pred)


def _reference(y_pred, y_true):
  """Pure-JAX mirror of the PyTorch forward()."""
  B, S, V = y_pred.shape
  logp = jax.nn.log_softmax(y_pred.astype(jnp.float32), axis=-1)       # (B, S, V)
  idx = jnp.where(y_true == 0, S - 1, y_true - 1).astype(jnp.int32)    # -1 wrap
  gathered = jnp.take_along_axis(logp, idx[..., None], axis=1)         # (B, S, V)
  return -jnp.sum(gathered, axis=0) / B                                # (S, V)


if __name__ == "__main__":
  key = jax.random.PRNGKey(0)

  # Config 1: S a multiple of 8 (grouped gather path), both tiled and single-tile vocab.
  B, S, V = 4, 16, 256
  k1, k2, key = jax.random.split(key, 3)
  y_pred = jax.random.normal(k1, (B, S, V), dtype=jnp.float32)
  # ids in [0, S) so that (id - 1) is a valid (possibly -1/wrapped) row index,
  # exactly as the PyTorch code requires.
  y_true = jax.random.randint(k2, (B, S), 0, S, dtype=jnp.int32)
  ref = _reference(y_pred, y_true)

  out_tiled = jax.block_until_ready(
      classifying_reconstruction_loss(y_pred, y_true, tv=128))   # 2 vocab tiles -> online lse
  assert out_tiled.shape == (S, V) and out_tiled.dtype == jnp.float32
  assert jnp.allclose(out_tiled, ref, atol=1e-4, rtol=1e-4), "tiled-vocab path mismatch"

  out_full = jax.block_until_ready(classifying_reconstruction_loss(y_pred, y_true))
  assert jnp.allclose(out_full, ref, atol=1e-4, rtol=1e-4), "single-tile path mismatch"

  # Config 2: S not a multiple of 8 -> exercises the <8-row tail of the grouped gather.
  B2, S2, V2 = 2, 12, 256
  k3, k4, key = jax.random.split(key, 3)
  yp2 = jax.random.normal(k3, (B2, S2, V2), dtype=jnp.float32)
  yt2 = jax.random.randint(k4, (B2, S2), 0, S2, dtype=jnp.int32)
  out_tail = jax.block_until_ready(
      classifying_reconstruction_loss(yp2, yt2, tv=128))
  assert jnp.allclose(out_tail, _reference(yp2, yt2), atol=1e-4, rtol=1e-4), \
      "tail path mismatch"

  print("KERNEL_OK")
</pallas_src>

<mosaic_0001>
module attributes {stable_mosaic.version = 11 : i64} {
  func.func @_recon_loss_kernel(%arg0: i32, %arg1: i32, %arg2: memref<4x16xi32, #tpu.memory_space<smem>>, %arg3: memref<1x16x128xf32, #tpu.memory_space<vmem>>, %arg4: memref<16x256xf32, #tpu.memory_space<vmem>>, %arg5: memref<16x1xf32, #tpu.memory_space<vmem>>, %arg6: memref<16x1xf32, #tpu.memory_space<vmem>>, %arg7: memref<16x1xf32, #tpu.memory_space<vmem>>) attributes {dimension_semantics = [#tpu.dimension_semantics<arbitrary>, #tpu.dimension_semantics<arbitrary>], iteration_bounds = array<i64: 4, 2>, scalar_prefetch = 1 : i64, scratch_operands = 3 : i64, tpu.core_type = #tpu.core_type<tc>, window_params = [{transform_indices = @transform_0, window_bounds = array<i64: 1, 16, 128>}, {pipeline_mode = #tpu.pipeline_mode<synchronous>, transform_indices = @transform_1, window_bounds = array<i64: 16, 256>}]} {
    %c0_i32 = arith.constant 0 : i32
    %0 = arith.cmpi eq, %arg0, %c0_i32 : i32
    %c0_i32_0 = arith.constant 0 : i32
    %1 = arith.cmpi eq, %arg1, %c0_i32_0 : i32
    %2 = arith.andi %0, %1 : i1
    %3 = arith.extui %2 : i1 to i32
    %c0_i32_1 = arith.constant 0 : i32
    %4 = arith.cmpi ne, %3, %c0_i32_1 : i32
    scf.if %4 {
      %cst_72 = arith.constant 0.000000e+00 : f32
      %186 = vector.broadcast %cst_72 : f32 to vector<16x256xf32>
      %c0_73 = arith.constant 0 : index
      %c0_74 = arith.constant 0 : index
      %187 = vector.load %arg4[%c0_73, %c0_74] : memref<16x256xf32, #tpu.memory_space<vmem>>, vector<16x256xf32>
      tpu.vector_store %arg4[%c0_73, %c0_74], %186 {strides = array<i32>} : memref<16x256xf32, #tpu.memory_space<vmem>>, vector<16x256xf32>,
      %cst_75 = arith.constant 0.000000e+00 : f32
      %188 = vector.broadcast %cst_75 : f32 to vector<16x1xf32>
      %c0_76 = arith.constant 0 : index
      %c0_77 = arith.constant 0 : index
      %189 = vector.load %arg7[%c0_76, %c0_77] : memref<16x1xf32, #tpu.memory_space<vmem>>, vector<16x1xf32>
      tpu.vector_store %arg7[%c0_76, %c0_77], %188 {strides = array<i32>} : memref<16x1xf32, #tpu.memory_space<vmem>>, vector<16x1xf32>,
    } else {
    }
    %c0_i32_2 = arith.constant 0 : i32
    %5 = arith.cmpi eq, %arg1, %c0_i32_2 : i32
    %6 = arith.extui %5 : i1 to i32
    %c0_i32_3 = arith.constant 0 : i32
    %7 = arith.cmpi ne, %6, %c0_i32_3 : i32
    scf.if %7 {
      %cst_72 = arith.constant 0xFF800000 : f32
      %186 = vector.broadcast %cst_72 : f32 to vector<16x1xf32>
      %c0_73 = arith.constant 0 : index
      %c0_74 = arith.constant 0 : index
      %187 = vector.load %arg5[%c0_73, %c0_74] : memref<16x1xf32, #tpu.memory_space<vmem>>, vector<16x1xf32>
      tpu.vector_store %arg5[%c0_73, %c0_74], %186 {strides = array<i32>} : memref<16x1xf32, #tpu.memory_space<vmem>>, vector<16x1xf32>,
      %cst_75 = arith.constant 0.000000e+00 : f32
      %188 = vector.broadcast %cst_75 : f32 to vector<16x1xf32>
      %c0_76 = arith.constant 0 : index
      %c0_77 = arith.constant 0 : index
      %189 = vector.load %arg6[%c0_76, %c0_77] : memref<16x1xf32, #tpu.memory_space<vmem>>, vector<16x1xf32>
      tpu.vector_store %arg6[%c0_76, %c0_77], %188 {strides = array<i32>} : memref<16x1xf32, #tpu.memory_space<vmem>>, vector<16x1xf32>,
    } else {
    }
    %c0_i32_4 = arith.constant 0 : i32
    %c8_i32 = arith.constant 8 : i32
    %8 = arith.muli %c0_i32_4, %c8_i32 : i32
    %9 = tpu.assume_multiple %8, 8 : i32
    %c0_i32_5 = arith.constant 0 : i32
    %10 = arith.addi %9, %c0_i32_5 : i32
    %11 = arith.index_cast %arg0 : i32 to index
    %12 = arith.index_cast %10 : i32 to index
    %13 = memref.load %arg2[%11, %12] : memref<4x16xi32, #tpu.memory_space<smem>>
    %c0 = arith.constant 0 : index
    %14 = arith.index_cast %13 : i32 to index
    %c0_6 = arith.constant 0 : index
    %15 = vector.load %arg3[%c0, %14, %c0_6] : memref<1x16x128xf32, #tpu.memory_space<vmem>>, vector<1x1x128xf32>
    %16 = vector.shape_cast %15 : vector<1x1x128xf32> to vector<1x128xf32>
    %c1_i32 = arith.constant 1 : i32
    %17 = arith.addi %9, %c1_i32 : i32
    %18 = arith.index_cast %arg0 : i32 to index
    %19 = arith.index_cast %17 : i32 to index
    %20 = memref.load %arg2[%18, %19] : memref<4x16xi32, #tpu.memory_space<smem>>
    %c0_7 = arith.constant 0 : index
    %21 = arith.index_cast %20 : i32 to index
    %c0_8 = arith.constant 0 : index
    %22 = vector.load %arg3[%c0_7, %21, %c0_8] : memref<1x16x128xf32, #tpu.memory_space<vmem>>, vector<1x1x128xf32>
    %23 = vector.shape_cast %22 : vector<1x1x128xf32> to vector<1x128xf32>
    %c2_i32 = arith.constant 2 : i32
    %24 = arith.addi %9, %c2_i32 : i32
    %25 = arith.index_cast %arg0 : i32 to index
    %26 = arith.index_cast %24 : i32 to index
    %27 = memref.load %arg2[%25, %26] : memref<4x16xi32, #tpu.memory_space<smem>>
    %c0_9 = arith.constant 0 : index
    %28 = arith.index_cast %27 : i32 to index
    %c0_10 = arith.constant 0 : index
    %29 = vector.load %arg3[%c0_9, %28, %c0_10] : memref<1x16x128xf32, #tpu.memory_space<vmem>>, vector<1x1x128xf32>
    %30 = vector.shape_cast %29 : vector<1x1x128xf32> to vector<1x128xf32>
    %c3_i32 = arith.constant 3 : i32
    %31 = arith.addi %9, %c3_i32 : i32
    %32 = arith.index_cast %arg0 : i32 to index
    %33 = arith.index_cast %31 : i32 to index
    %34 = memref.load %arg2[%32, %33] : memref<4x16xi32, #tpu.memory_space<smem>>
    %c0_11 = arith.constant 0 : index
    %35 = arith.index_cast %34 : i32 to index
    %c0_12 = arith.constant 0 : index
    %36 = vector.load %arg3[%c0_11, %35, %c0_12] : memref<1x16x128xf32, #tpu.memory_space<vmem>>, vector<1x1x128xf32>
    %37 = vector.shape_cast %36 : vector<1x1x128xf32> to vector<1x128xf32>
    %c4_i32 = arith.constant 4 : i32
    %38 = arith.addi %9, %c4_i32 : i32
    %39 = arith.index_cast %arg0 : i32 to index
    %40 = arith.index_cast %38 : i32 to index
    %41 = memref.load %arg2[%39, %40] : memref<4x16xi32, #tpu.memory_space<smem>>
    %c0_13 = arith.constant 0 : index
    %42 = arith.index_cast %41 : i32 to index
    %c0_14 = arith.constant 0 : index
    %43 = vector.load %arg3[%c0_13, %42, %c0_14] : memref<1x16x128xf32, #tpu.memory_space<vmem>>, vector<1x1x128xf32>
    %44 = vector.shape_cast %43 : vector<1x1x128xf32> to vector<1x128xf32>
    %c5_i32 = arith.constant 5 : i32
    %45 = arith.addi %9, %c5_i32 : i32
    %46 = arith.index_cast %arg0 : i32 to index
    %47 = arith.index_cast %45 : i32 to index
    %48 = memref.load %arg2[%46, %47] : memref<4x16xi32, #tpu.memory_space<smem>>
    %c0_15 = arith.constant 0 : index
    %49 = arith.index_cast %48 : i32 to index
    %c0_16 = arith.constant 0 : index
    %50 = vector.load %arg3[%c0_15, %49, %c0_16] : memref<1x16x128xf32, #tpu.memory_space<vmem>>, vector<1x1x128xf32>
    %51 = vector.shape_cast %50 : vector<1x1x128xf32> to vector<1x128xf32>
    %c6_i32 = arith.constant 6 : i32
    %52 = arith.addi %9, %c6_i32 : i32
    %53 = arith.index_cast %arg0 : i32 to index
    %54 = arith.index_cast %52 : i32 to index
    %55 = memref.load %arg2[%53, %54] : memref<4x16xi32, #tpu.memory_space<smem>>
    %c0_17 = arith.constant 0 : index
    %56 = arith.index_cast %55 : i32 to index
    %c0_18 = arith.constant 0 : index
    %57 = vector.load %arg3[%c0_17, %56, %c0_18] : memref<1x16x128xf32, #tpu.memory_space<vmem>>, vector<1x1x128xf32>
    %58 = vector.shape_cast %57 : vector<1x1x128xf32> to vector<1x128xf32>
    %c7_i32 = arith.constant 7 : i32
    %59 = arith.addi %9, %c7_i32 : i32
    %60 = arith.index_cast %arg0 : i32 to index
    %61 = arith.index_cast %59 : i32 to index
    %62 = memref.load %arg2[%60, %61] : memref<4x16xi32, #tpu.memory_space<smem>>
    %c0_19 = arith.constant 0 : index
    %63 = arith.index_cast %62 : i32 to index
    %c0_20 = arith.constant 0 : index
    %64 = vector.load %arg3[%c0_19, %63, %c0_20] : memref<1x16x128xf32, #tpu.memory_space<vmem>>, vector<1x1x128xf32>
    %65 = vector.shape_cast %64 : vector<1x1x128xf32> to vector<1x128xf32>
    %66 = tpu.concatenate %16, %23, %30, %37, %44, %51, %58, %65 in 0 : vector<1x128xf32>, vector<1x128xf32>, vector<1x128xf32>, vector<1x128xf32>, vector<1x128xf32>, vector<1x128xf32>, vector<1x128xf32>, vector<1x128xf32> -> vector<8x128xf32>
    %67 = arith.index_cast %9 : i32 to index
    %c0_21 = arith.constant 0 : index
    %68 = vector.load %arg5[%67, %c0_21] : memref<16x1xf32, #tpu.memory_space<vmem>>, vector<8x1xf32>
    %cst = arith.constant dense<0xFF800000> : vector<8xf32>
    %69 = vector.multi_reduction <maximumf>, %66, %cst [1] : vector<8x128xf32> to vector<8xf32>
    %70 = vector.shape_cast %69 : vector<8xf32> to vector<8x1xf32>
    %71 = arith.maximumf %68, %70 : vector<8x1xf32>
    %72 = arith.index_cast %9 : i32 to index
    %c0_22 = arith.constant 0 : index
    %73 = vector.load %arg6[%72, %c0_22] : memref<16x1xf32, #tpu.memory_space<vmem>>, vector<8x1xf32>
    %74 = arith.subf %68, %71 : vector<8x1xf32>
    %75 = math.exp %74 : vector<8x1xf32>
    %76 = arith.mulf %73, %75 : vector<8x1xf32>
    %77 = vector.broadcast %71 : vector<8x1xf32> to vector<8x128xf32>
    %78 = arith.subf %66, %77 : vector<8x128xf32>
    %79 = math.exp %78 : vector<8x128xf32>
    %cst_23 = arith.constant dense<0.000000e+00> : vector<8xf32>
    %80 = vector.multi_reduction <add>, %79, %cst_23 [1] : vector<8x128xf32> to vector<8xf32>
    %81 = vector.shape_cast %80 : vector<8xf32> to vector<8x1xf32>
    %82 = arith.addf %76, %81 : vector<8x1xf32>
    %83 = arith.index_cast %9 : i32 to index
    %c0_24 = arith.constant 0 : index
    %84 = vector.load %arg6[%83, %c0_24] : memref<16x1xf32, #tpu.memory_space<vmem>>, vector<8x1xf32>
    tpu.vector_store %arg6[%83, %c0_24], %82 {strides = array<i32>} : memref<16x1xf32, #tpu.memory_space<vmem>>, vector<8x1xf32>,
    %85 = arith.index_cast %9 : i32 to index
    %c0_25 = arith.constant 0 : index
    %86 = vector.load %arg5[%85, %c0_25] : memref<16x1xf32, #tpu.memory_space<vmem>>, vector<8x1xf32>
    tpu.vector_store %arg5[%85, %c0_25], %71 {strides = array<i32>} : memref<16x1xf32, #tpu.memory_space<vmem>>, vector<8x1xf32>,
    %c0_i32_26 = arith.constant 0 : i32
    %87 = arith.cmpi eq, %arg1, %c0_i32_26 : i32
    %88 = arith.extui %87 : i1 to i32
    %c0_i32_27 = arith.constant 0 : i32
    %89 = arith.cmpi ne, %88, %c0_i32_27 : i32
    scf.if %89 {
      %186 = arith.index_cast %9 : i32 to index
      %c0_72 = arith.constant 0 : index
      %187 = vector.load %arg4[%186, %c0_72] : memref<16x256xf32, #tpu.memory_space<vmem>>, vector<8x128xf32>
      %188 = arith.addf %187, %66 : vector<8x128xf32>
      %189 = arith.index_cast %9 : i32 to index
      %c0_73 = arith.constant 0 : index
      %190 = vector.load %arg4[%189, %c0_73] : memref<16x256xf32, #tpu.memory_space<vmem>>, vector<8x128xf32>
      tpu.vector_store %arg4[%189, %c0_73], %188 {strides = array<i32>} : memref<16x256xf32, #tpu.memory_space<vmem>>, vector<8x128xf32>,
    } else {
    }
    %c1_i32_28 = arith.constant 1 : i32
    %90 = arith.cmpi eq, %arg1, %c1_i32_28 : i32
    %91 = arith.extui %90 : i1 to i32
    %c0_i32_29 = arith.constant 0 : i32
    %92 = arith.cmpi ne, %91, %c0_i32_29 : i32
    scf.if %92 {
      %186 = arith.index_cast %9 : i32 to index
      %c128 = arith.constant 128 : index
      %187 = vector.load %arg4[%186, %c128] : memref<16x256xf32, #tpu.memory_space<vmem>>, vector<8x128xf32>
      %188 = arith.addf %187, %66 : vector<8x128xf32>
      %189 = arith.index_cast %9 : i32 to index
      %c128_72 = arith.constant 128 : index
      %190 = vector.load %arg4[%189, %c128_72] : memref<16x256xf32, #tpu.memory_space<vmem>>, vector<8x128xf32>
      tpu.vector_store %arg4[%189, %c128_72], %188 {strides = array<i32>} : memref<16x256xf32, #tpu.memory_space<vmem>>, vector<8x128xf32>,
    } else {
    }
    %c1_i32_30 = arith.constant 1 : i32
    %c8_i32_31 = arith.constant 8 : i32
    %93 = arith.muli %c1_i32_30, %c8_i32_31 : i32
    %94 = tpu.assume_multiple %93, 8 : i32
    %c0_i32_32 = arith.constant 0 : i32
    %95 = arith.addi %94, %c0_i32_32 : i32
    %96 = arith.index_cast %arg0 : i32 to index
    %97 = arith.index_cast %95 : i32 to index
    %98 = memref.load %arg2[%96, %97] : memref<4x16xi32, #tpu.memory_space<smem>>
    %c0_33 = arith.constant 0 : index
    %99 = arith.index_cast %98 : i32 to index
    %c0_34 = arith.constant 0 : index
    %100 = vector.load %arg3[%c0_33, %99, %c0_34] : memref<1x16x128xf32, #tpu.memory_space<vmem>>, vector<1x1x128xf32>
    %101 = vector.shape_cast %100 : vector<1x1x128xf32> to vector<1x128xf32>
    %c1_i32_35 = arith.constant 1 : i32
    %102 = arith.addi %94, %c1_i32_35 : i32
    %103 = arith.index_cast %arg0 : i32 to index
    %104 = arith.index_cast %102 : i32 to index
    %105 = memref.load %arg2[%103, %104] : memref<4x16xi32, #tpu.memory_space<smem>>
    %c0_36 = arith.constant 0 : index
    %106 = arith.index_cast %105 : i32 to index
    %c0_37 = arith.constant 0 : index
    %107 = vector.load %arg3[%c0_36, %106, %c0_37] : memref<1x16x128xf32, #tpu.memory_space<vmem>>, vector<1x1x128xf32>
    %108 = vector.shape_cast %107 : vector<1x1x128xf32> to vector<1x128xf32>
    %c2_i32_38 = arith.constant 2 : i32
    %109 = arith.addi %94, %c2_i32_38 : i32
    %110 = arith.index_cast %arg0 : i32 to index
    %111 = arith.index_cast %109 : i32 to index
    %112 = memref.load %arg2[%110, %111] : memref<4x16xi32, #tpu.memory_space<smem>>
    %c0_39 = arith.constant 0 : index
    %113 = arith.index_cast %112 : i32 to index
    %c0_40 = arith.constant 0 : index
    %114 = vector.load %arg3[%c0_39, %113, %c0_40] : memref<1x16x128xf32, #tpu.memory_space<vmem>>, vector<1x1x128xf32>
    %115 = vector.shape_cast %114 : vector<1x1x128xf32> to vector<1x128xf32>
    %c3_i32_41 = arith.constant 3 : i32
    %116 = arith.addi %94, %c3_i32_41 : i32
    %117 = arith.index_cast %arg0 : i32 to index
    %118 = arith.index_cast %116 : i32 to index
    %119 = memref.load %arg2[%117, %118] : memref<4x16xi32, #tpu.memory_space<smem>>
    %c0_42 = arith.constant 0 : index
    %120 = arith.index_cast %119 : i32 to index
    %c0_43 = arith.constant 0 : index
    %121 = vector.load %arg3[%c0_42, %120, %c0_43] : memref<1x16x128xf32, #tpu.memory_space<vmem>>, vector<1x1x128xf32>
    %122 = vector.shape_cast %121 : vector<1x1x128xf32> to vector<1x128xf32>
    %c4_i32_44 = arith.constant 4 : i32
    %123 = arith.addi %94, %c4_i32_44 : i32
    %124 = arith.index_cast %arg0 : i32 to index
    %125 = arith.index_cast %123 : i32 to index
    %126 = memref.load %arg2[%124, %125] : memref<4x16xi32, #tpu.memory_space<smem>>
    %c0_45 = arith.constant 0 : index
    %127 = arith.index_cast %126 : i32 to index
    %c0_46 = arith.constant 0 : index
    %128 = vector.load %arg3[%c0_45, %127, %c0_46] : memref<1x16x128xf32, #tpu.memory_space<vmem>>, vector<1x1x128xf32>
    %129 = vector.shape_cast %128 : vector<1x1x128xf32> to vector<1x128xf32>
    %c5_i32_47 = arith.constant 5 : i32
    %130 = arith.addi %94, %c5_i32_47 : i32
    %131 = arith.index_cast %arg0 : i32 to index
    %132 = arith.index_cast %130 : i32 to index
    %133 = memref.load %arg2[%131, %132] : memref<4x16xi32, #tpu.memory_space<smem>>
    %c0_48 = arith.constant 0 : index
    %134 = arith.index_cast %133 : i32 to index
    %c0_49 = arith.constant 0 : index
    %135 = vector.load %arg3[%c0_48, %134, %c0_49] : memref<1x16x128xf32, #tpu.memory_space<vmem>>, vector<1x1x128xf32>
    %136 = vector.shape_cast %135 : vector<1x1x128xf32> to vector<1x128xf32>
    %c6_i32_50 = arith.constant 6 : i32
    %137 = arith.addi %94, %c6_i32_50 : i32
    %138 = arith.index_cast %arg0 : i32 to index
    %139 = arith.index_cast %137 : i32 to index
    %140 = memref.load %arg2[%138, %139] : memref<4x16xi32, #tpu.memory_space<smem>>
    %c0_51 = arith.constant 0 : index
    %141 = arith.index_cast %140 : i32 to index
    %c0_52 = arith.constant 0 : index
    %142 = vector.load %arg3[%c0_51, %141, %c0_52] : memref<1x16x128xf32, #tpu.memory_space<vmem>>, vector<1x1x128xf32>
    %143 = vector.shape_cast %142 : vector<1x1x128xf32> to vector<1x128xf32>
    %c7_i32_53 = arith.constant 7 : i32
    %144 = arith.addi %94, %c7_i32_53 : i32
    %145 = arith.index_cast %arg0 : i32 to index
    %146 = arith.index_cast %144 : i32 to index
    %147 = memref.load %arg2[%145, %146] : memref<4x16xi32, #tpu.memory_space<smem>>
    %c0_54 = arith.constant 0 : index
    %148 = arith.index_cast %147 : i32 to index
    %c0_55 = arith.constant 0 : index
    %149 = vector.load %arg3[%c0_54, %148, %c0_55] : memref<1x16x128xf32, #tpu.memory_space<vmem>>, vector<1x1x128xf32>
    %150 = vector.shape_cast %149 : vector<1x1x128xf32> to vector<1x128xf32>
    %151 = tpu.concatenate %101, %108, %115, %122, %129, %136, %143, %150 in 0 : vector<1x128xf32>, vector<1x128xf32>, vector<1x128xf32>, vector<1x128xf32>, vector<1x128xf32>, vector<1x128xf32>, vector<1x128xf32>, vector<1x128xf32> -> vector<8x128xf32>
    %152 = arith.index_cast %94 : i32 to index
    %c0_56 = arith.constant 0 : index
    %153 = vector.load %arg5[%152, %c0_56] : memref<16x1xf32, #tpu.memory_space<vmem>>, vector<8x1xf32>
    %cst_57 = arith.constant dense<0xFF800000> : vector<8xf32>
    %154 = vector.multi_reduction <maximumf>, %151, %cst_57 [1] : vector<8x128xf32> to vector<8xf32>
    %155 = vector.shape_cast %154 : vector<8xf32> to vector<8x1xf32>
    %156 = arith.maximumf %153, %155 : vector<8x1xf32>
    %157 = arith.index_cast %94 : i32 to index
    %c0_58 = arith.constant 0 : index
    %158 = vector.load %arg6[%157, %c0_58] : memref<16x1xf32, #tpu.memory_space<vmem>>, vector<8x1xf32>
    %159 = arith.subf %153, %156 : vector<8x1xf32>
    %160 = math.exp %159 : vector<8x1xf32>
    %161 = arith.mulf %158, %160 : vector<8x1xf32>
    %162 = vector.broadcast %156 : vector<8x1xf32> to vector<8x128xf32>
    %163 = arith.subf %151, %162 : vector<8x128xf32>
    %164 = math.exp %163 : vector<8x128xf32>
    %cst_59 = arith.constant dense<0.000000e+00> : vector<8xf32>
    %165 = vector.multi_reduction <add>, %164, %cst_59 [1] : vector<8x128xf32> to vector<8xf32>
    %166 = vector.shape_cast %165 : vector<8xf32> to vector<8x1xf32>
    %167 = arith.addf %161, %166 : vector<8x1xf32>
    %168 = arith.index_cast %94 : i32 to index
    %c0_60 = arith.constant 0 : index
    %169 = vector.load %arg6[%168, %c0_60] : memref<16x1xf32, #tpu.memory_space<vmem>>, vector<8x1xf32>
    tpu.vector_store %arg6[%168, %c0_60], %167 {strides = array<i32>} : memref<16x1xf32, #tpu.memory_space<vmem>>, vector<8x1xf32>,
    %170 = arith.index_cast %94 : i32 to index
    %c0_61 = arith.constant 0 : index
    %171 = vector.load %arg5[%170, %c0_61] : memref<16x1xf32, #tpu.memory_space<vmem>>, vector<8x1xf32>
    tpu.vector_store %arg5[%170, %c0_61], %156 {strides = array<i32>} : memref<16x1xf32, #tpu.memory_space<vmem>>, vector<8x1xf32>,
    %c0_i32_62 = arith.constant 0 : i32
    %172 = arith.cmpi eq, %arg1, %c0_i32_62 : i32
    %173 = arith.extui %172 : i1 to i32
    %c0_i32_63 = arith.constant 0 : i32
    %174 = arith.cmpi ne, %173, %c0_i32_63 : i32
    scf.if %174 {
      %186 = arith.index_cast %94 : i32 to index
      %c0_72 = arith.constant 0 : index
      %187 = vector.load %arg4[%186, %c0_72] : memref<16x256xf32, #tpu.memory_space<vmem>>, vector<8x128xf32>
      %188 = arith.addf %187, %151 : vector<8x128xf32>
      %189 = arith.index_cast %94 : i32 to index
      %c0_73 = arith.constant 0 : index
      %190 = vector.load %arg4[%189, %c0_73] : memref<16x256xf32, #tpu.memory_space<vmem>>, vector<8x128xf32>
      tpu.vector_store %arg4[%189, %c0_73], %188 {strides = array<i32>} : memref<16x256xf32, #tpu.memory_space<vmem>>, vector<8x128xf32>,
    } else {
    }
    %c1_i32_64 = arith.constant 1 : i32
    %175 = arith.cmpi eq, %arg1, %c1_i32_64 : i32
    %176 = arith.extui %175 : i1 to i32
    %c0_i32_65 = arith.constant 0 : i32
    %177 = arith.cmpi ne, %176, %c0_i32_65 : i32
    scf.if %177 {
      %186 = arith.index_cast %94 : i32 to index
      %c128 = arith.constant 128 : index
      %187 = vector.load %arg4[%186, %c128] : memref<16x256xf32, #tpu.memory_space<vmem>>, vector<8x128xf32>
      %188 = arith.addf %187, %151 : vector<8x128xf32>
      %189 = arith.index_cast %94 : i32 to index
      %c128_72 = arith.constant 128 : index
      %190 = vector.load %arg4[%189, %c128_72] : memref<16x256xf32, #tpu.memory_space<vmem>>, vector<8x128xf32>
      tpu.vector_store %arg4[%189, %c128_72], %188 {strides = array<i32>} : memref<16x256xf32, #tpu.memory_space<vmem>>, vector<8x128xf32>,
    } else {
    }
    %c2_i32_66 = arith.constant 2 : i32
    %c1_i32_67 = arith.constant 1 : i32
    %178 = arith.cmpi eq, %arg1, %c1_i32_67 : i32
    %179 = arith.extui %178 : i1 to i32
    %c0_i32_68 = arith.constant 0 : i32
    %180 = arith.cmpi ne, %179, %c0_i32_68 : i32
    scf.if %180 {
      %c0_72 = arith.constant 0 : index
      %c0_73 = arith.constant 0 : index
      %186 = vector.load %arg7[%c0_72, %c0_73] : memref<16x1xf32, #tpu.memory_space<vmem>>, vector<16x1xf32>
      %c0_74 = arith.constant 0 : index
      %c0_75 = arith.constant 0 : index
      %187 = vector.load %arg5[%c0_74, %c0_75] : memref<16x1xf32, #tpu.memory_space<vmem>>, vector<16x1xf32>
      %c0_76 = arith.constant 0 : index
      %c0_77 = arith.constant 0 : index
      %188 = vector.load %arg6[%c0_76, %c0_77] : memref<16x1xf32, #tpu.memory_space<vmem>>, vector<16x1xf32>
      %189 = math.log %188 : vector<16x1xf32>
      %190 = arith.addf %187, %189 : vector<16x1xf32>
      %191 = arith.addf %186, %190 : vector<16x1xf32>
      %c0_78 = arith.constant 0 : index
      %c0_79 = arith.constant 0 : index
      %192 = vector.load %arg7[%c0_78, %c0_79] : memref<16x1xf32, #tpu.memory_space<vmem>>, vector<16x1xf32>
      tpu.vector_store %arg7[%c0_78, %c0_79], %191 {strides = array<i32>} : memref<16x1xf32, #tpu.memory_space<vmem>>, vector<16x1xf32>,
    } else {
    }
    %c3_i32_69 = arith.constant 3 : i32
    %181 = arith.cmpi eq, %arg0, %c3_i32_69 : i32
    %c1_i32_70 = arith.constant 1 : i32
    %182 = arith.cmpi eq, %arg1, %c1_i32_70 : i32
    %183 = arith.andi %181, %182 : i1
    %184 = arith.extui %183 : i1 to i32
    %c0_i32_71 = arith.constant 0 : i32
    %185 = arith.cmpi ne, %184, %c0_i32_71 : i32
    scf.if %185 {
      %c0_72 = arith.constant 0 : index
      %c0_73 = arith.constant 0 : index
      %186 = vector.load %arg7[%c0_72, %c0_73] : memref<16x1xf32, #tpu.memory_space<vmem>>, vector<16x1xf32>
      %c0_74 = arith.constant 0 : index
      %c0_75 = arith.constant 0 : index
      %187 = vector.load %arg4[%c0_74, %c0_75] : memref<16x256xf32, #tpu.memory_space<vmem>>, vector<16x256xf32>
      %188 = vector.broadcast %186 : vector<16x1xf32> to vector<16x256xf32>
      %189 = arith.subf %188, %187 : vector<16x256xf32>
      %cst_76 = arith.constant 2.500000e-01 : f32
      %190 = vector.broadcast %cst_76 : f32 to vector<16x256xf32>
      %191 = arith.mulf %189, %190 : vector<16x256xf32>
      %c0_77 = arith.constant 0 : index
      %c0_78 = arith.constant 0 : index
      %192 = vector.load %arg4[%c0_77, %c0_78] : memref<16x256xf32, #tpu.memory_space<vmem>>, vector<16x256xf32>
      tpu.vector_store %arg4[%c0_77, %c0_78], %191 {strides = array<i32>} : memref<16x256xf32, #tpu.memory_space<vmem>>, vector<16x256xf32>,
    } else {
    }
    return
  }
  func.func @transform_0(%arg0: i32, %arg1: i32, %arg2: memref<4x16xi32, #tpu.memory_space<smem>>) -> (i32, i32, i32) {
    %c0_i32 = arith.constant 0 : i32
    %c0_i32_0 = arith.constant 0 : i32
    return %arg0, %c0_i32, %arg1 : i32, i32, i32
  }
  func.func @transform_1(%arg0: i32, %arg1: i32, %arg2: memref<4x16xi32, #tpu.memory_space<smem>>) -> (i32, i32) {
    %c0_i32 = arith.constant 0 : i32
    %c0_i32_0 = arith.constant 0 : i32
    %c0_i32_1 = arith.constant 0 : i32
    return %c0_i32, %c0_i32_0 : i32, i32
  }
}

</mosaic_0001>

<bundles_post_ra>
// kernel: tpu_custom_call.1
= control target key start
LH: loop header
LB: loop body
LE: loop exit
PB: predicated region body
PF: predicated region fallthrough
CT: control target
= control target key end

     0   :  { %s1185_s0 = inlined_call_operand.hbm [shape: s32[4,16], index: 0, kind: input, shape index: {}]   ;;  %s1186_s1 = inlined_call_operand.hbm [shape: f32[4,16,256], index: 1, kind: input, shape index: {}]   ;;  %s1187_s2 = inlined_call_operand.hbm [shape: f32[16,256], index: 2, kind: output, shape index: {}]  }
   0x1   :  { %1189 = sst [smem:[#allocation14_spill]] %s1186_s1  ;;  %s754_s11 = scalar_lea.hbm %s1185_s0, 64 }
   0x2   :  { %p755_p0 = scmp.ne.s32.totalorder %s1185_s0, %s754_s11  ;;  %p758_p1 = scmp.lt.u32.totalorder %s754_s11, %s1185_s0 }
   0x4   :  { %p760_p2 = pnand %p758_p1, %p755_p0 }
   0x6   :  { %763 = shalt.err (!%p760_p2)  }
   0x7   :  { %s894_s16 = smov [#allocation6]  }
   0x8   :  { %8 = dma.hbm_to_smem %s1185_s0, 64, %s894_s16, [#allocation5] }
   0x9   :  { %852 = dma.done.wait [#allocation5], 64 }
   0xa   :  { %853 = vsyncadd [#allocation5], 4294967232 }
   0xb   :  { %10 = sfence }
   0xc   :  { %11 = vsyncpa [#allocation8], 0 }
   0xd   :  { %13 = vsyncpa [#allocation8 + $0x1], 0 }
   0xe   :  { %14 = vsyncpa [#allocation9], 0  ;;  %s934_s19 = smov 0   ;;  %s936_s20 = smov 0  }
   0xf   :  { %s938_s21 = smov 0   ;;  %s940_s22 = smov 0  }
  0x10   :  { %s942_s23 = smov 0   ;;  %s944_s24 = smov 0  }
  0x11   :  { %s946_s25 = smov 0   ;;  %s948_s0 = smov 0  }
  0x12 LB: > { %s1188_s26 = sadd.s32 4294967295, %s892_s0   ;;  %s29_s27 = sadd.s32 1, %s884_s24  ;;  %s892_s0 = sphi %s948_s0, %s20_s0   ;;  %s888_s25 = sphi %s946_s25, %s1203_s25   ;;  %s884_s24 = sphi %s944_s24, %s1202_s24   ;;  %s880_s23 = sphi %s942_s23, %s1201_s23   ;;  %s876_s22 = sphi %s940_s22, %s1200_s22   ;;  %s872_s21 = sphi %s938_s21, %s1199_s21   ;;  %s868_s20 = sphi %s936_s20, %s1198_s20   ;;  %s864_s19 = sphi %s934_s19, %s1197_s19  }
  0x13   : > { %p30_p3 = scmp.ge.s32.totalorder %s29_s27, 2  ;;  %s32_s28 = sadd.s32 1, %s888_s25 }
  0x14   : > { %s41_s29 = sadd.s32 1, %s872_s21  ;;  %p48_p4 = scmp.ne.s32.totalorder %s872_s21, %s868_s20 }
  0x15   : > { %s1205_s27 = smov (%p30_p3, %s29_s27), 0  ;;  %s1207_s28 = smov (!%p30_p3, %s32_s28), %s888_s25 }
  0x16   : > { %s37_s30 = ssub.s32 %s884_s24, %s1205_s27  ;;  %p49_p5 = scmp.eq.s32.totalorder %s892_s0, 0 }
  0x17   : > { %p34_p6 = scmp.ge.s32.totalorder %s1207_s28, 4  ;;  %p54_p7 = scmp.ne.s32.totalorder %s868_s20, %s864_s19 }
  0x18   : > { %p985_p8 = por %p49_p5, %p48_p4  ;;  %p55_p9 = scmp.eq.s32.totalorder %s1188_s26, 0 }
  0x19   : > { %s1209_s28 = smov (%p34_p6, %s1207_s28), 0  ;;  %p660_p11 = scmp.lt.s32.totalorder %s892_s0, 8 }
  0x1a   : > { %p993_p10 = por %p55_p9, %p54_p7  ;;  %s36_s5 = ssub.s32 %s888_s25, %s1209_s28 }
  0x1b   : > { %s38_s6 = sor.u32 %s37_s30, %s36_s5  ;;  %s99_s7 = sand.u32 1, %s872_s21  }
  0x1c   : > { %p39_p12 = scmp.eq.s32.totalorder %s38_s6, 0  ;;  %s620_s8 = sshll.u32 %s99_s7, 4 }
  0x1d   : > { %s621_s9 = sshll.u32 %s888_s25, 2  ;;  %s103_s13 = scalar_lea.vmem [#allocation7], %s620_s8 }
  0x1e   : > { %s1003_s10 = scalar_select %p39_p12, %s872_s21, %s41_s29  }
  0x1f   : > { %s108_s11 = sadd.s32 %s884_s24, %s621_s9  ;;  %s111_s14 = sshll.u32 %s103_s13, 4  ;;  %s1011_s14 = int_to_ptr.vmem [resolvable:$true] %s111_s14 }
  0x20   : > { %s622_s12 = sshll.u32 %s108_s11, 7  ;;  %s1192_s1 = sld [smem:[#allocation14_spill]] }
  0x21   : > { %p1017_p13 = pnand %p660_p11, %p985_p8  ;;  %s1022_s19 = scalar_lea.sflag [#allocation8], %s99_s7 }
  0x23   : > { %p766_p2 = pneg %p1017_p13 }
  0x26   : > { %s1009_s17 = scalar_lea.hbm %s1192_s1, %s622_s12  ;;  %s769_s5 = scalar_lea.hbm %s1192_s1, 2048 }
  0x27   : > { %s764_s29 = scalar_lea.hbm %s1009_s17, 256  ;;  %p770_p5 = scmp.lt.u32.totalorder %s1009_s17, %s1192_s1 }
  0x28   : > { %p765_p1 = scmp.ne.s32.totalorder %s1009_s17, %s764_s29  ;;  %p771_p6 = scmp.lt.u32.totalorder %s769_s5, %s764_s29 }
  0x29   : > { %p773_p8 = scmp.lt.u32.totalorder %s764_s29, %s1009_s17 }
  0x2a   : > { %p767_p3 = pnand %p766_p2, %p765_p1  ;;  %p772_p7 = por %p771_p6, %p770_p5 }
  0x2c   : > { %p768_p4 = pneg %p767_p3  ;;  %p774_p9 = por %p773_p8, %p772_p7 }
  0x2e   : > { %p775_p11 = pnand %p774_p9, %p768_p4 }
  0x30   : > { %778 = shalt.err (!%p775_p11)
}
  0x31   : > { %s779_s7 = scalar_lea.vmem %s1011_s14, 256  ;;  %s895_s9 = smov [#allocation7]  }
  0x32   : > { %p780_p12 = scmp.ne.s32.totalorder %s1011_s14, %s779_s7  ;;  %s784_s11 = sshll.u32 %s895_s9, 4  ;;  %s785_s11 = int_to_ptr.vmem [resolvable:$false] %s784_s11 }
  0x33   : > { %s786_s12 = scalar_lea.vmem %s785_s11, 512  ;;  %p787_p0 = scmp.lt.s32.totalorder %s1011_s14, %s785_s11 }
  0x34   : > { %p782_p1 = pnand %p780_p12, %p766_p2  ;;  %p788_p5 = scmp.lt.s32.totalorder %s786_s12, %s779_s7 }
  0x36   : > { %p783_p3 = pneg %p782_p1  ;;  %p789_p6 = por %p788_p5, %p787_p0 }
  0x38   : > { %p790_p7 = pnand %p789_p6, %p783_p3 }
  0x3a   : > { %793 = shalt.err (!%p790_p7)
}
  0x3b   : > { %s896_s13 = smov 256   ;;  %s897_s15 = smov 128  }
  0x3c   : > { %s898_s16 = smov 8   ;;  %p119_p2 = scmp.lt.s32.totalorder %s892_s0, 9 }
  0x3d   : > { %659 = dma.hbm_to_vmem [thread:$0]  (!%p1017_p13), %s1009_s17, 256, %s1011_s14, %s1022_s19, %s896_s13, %s897_s15, %s898_s16  }
  0x3e   : > { %p1194_p4 = scmp.ge.s32.totalorder %s892_s0, 1 }
  0x40   : > { %p120_p8 = pnand %p1194_p4, %p119_p2 }
  0x41   : > { %s125_s29 = sand.u32 (!%p120_p8), 1, %s868_s20  }
  0x42   : > { %123 = sbr.rel (%p120_p8) target bundleno = 1199 (0x4af), region = 24  ;;  %s624_s30 = sshll.u32 (!%p120_p8), %s125_s29, 4 }
  0x43   : > { %s126_s3 = scalar_lea.sflag (!%p120_p8), [#allocation8], %s125_s29  ;;  %s1054_s5 = scalar_lea.vmem (!%p120_p8), [#allocation7], %s624_s30 }
  0x49   : > { %855 = dma.done.wait (%p993_p10), %s126_s3, 256  }
  0x4a   : > { %857 = vsyncadd (%p993_p10), %s126_s3, 4294967040  ;;  %p143_p0 = scmp.eq.s32.totalorder %s880_s23, 0  ;;  %p144_p13 = scmp.eq.s32.totalorder %s876_s22, 0 }
  0x4c   : > { %p145_p9 = pnand %p144_p13, %p143_p0 }
  0x4d   : > { %vm153_vm0 = vcmask (!%p145_p9), 7168   ;;  %v899_v0 = vmov (!%p145_p9), 0.0  }
  0x4e   : > { %148 = sbr.rel (%p145_p9) target bundleno = 85 (0x55), region = 32  ;;  %149 = vst [vmem:[#allocation10] sm:$0xff] (!%p145_p9), %v899_v0  ;;  %150 = vst [vmem:[#allocation10 + $0x8] sm:$0xff] (!%p145_p9), %v899_v0 }
  0x4f   : > { %151 = vst [vmem:[#allocation10 + $0x10] sm:$0xff] (!%p145_p9), %v899_v0  ;;  %152 = vst [vmem:[#allocation10 + $0x18] sm:$0xff] (!%p145_p9), %v899_v0 }
  0x50   : > { %154 = vst.msk [vmem:[#allocation4] sm:$0xff] (!%p145_p9), %vm153_vm0, %v899_v0  ;;  %155 = vst.msk [vmem:[#allocation4 + $0x8] sm:$0xff] (!%p145_p9), %vm153_vm0, %v899_v0 }
  0x55 PF: > { %p625_p11 = scmp.ne.s32.totalorder %s876_s22, 0 }
  0x56   : > { %vm159_vm1 = vcmask (!%p625_p11), 7168   ;;  %v900_v1 = vmov (!%p625_p11), -inf   ;;  %v901_v2 = vmov (!%p625_p11), 0.0  }
  0x57   : > { %158 = sbr.rel (%p625_p11) target bundleno = 94 (0x5e), region = 36  ;;  %160 = vst.msk [vmem:[#allocation2] sm:$0xff] (!%p625_p11), %vm159_vm1, %v900_v1  ;;  %161 = vst.msk [vmem:[#allocation2 + $0x8] sm:$0xff] (!%p625_p11), %vm159_vm1, %v900_v1 }
  0x58   : > { %162 = vst.msk [vmem:[#allocation3] sm:$0xff] (!%p625_p11), %vm159_vm1, %v901_v2  ;;  %163 = vst.msk [vmem:[#allocation3 + $0x8] sm:$0xff] (!%p625_p11), %vm159_vm1, %v901_v2 }
  0x5e PF: > { %s1066_s4 = sshll.u32 %s880_s23, 7  ;;  %vm268_vm2 = vcmask 1040384   ;;  %vm270_vm3 = vcmask 1041408   ;;  %vm272_vm4 = vcmask 1042432   ;;  %vm274_vm5 = vcmask 1043456   ;;  %v282_v26 = vld [vmem:[#allocation2] sm:$0xff] }
  0x5f   : > { %s167_s14 = sld [smem:[#allocation6 + %s1066_s4]]  ;;  %s177_s17 = sadd.s32 1, %s1066_s4  ;;  %vm276_vm6 = vcmask 1044480   ;;  %vm278_vm7 = vcmask 1045504   ;;  %vm280_vm8 = vcmask 1046528   ;;  %v902_v25 = vmov 0  }
  0x60   : > { %s178_s18 = sld [smem:[#allocation6 + %s177_s17]]  ;;  %s188_s19 = sadd.s32 2, %s1066_s4  ;;  %739 = vset.pattern.permute.xlu0 %v902_v25  ;;  %vm302_vm9 = vcmask 7168   ;;  %v286_v36 = vld [vmem:[#allocation3] sm:$0xff] }
  0x61   : > { %s189_s6 = sld [smem:[#allocation6 + %s188_s19]]  ;;  %s199_s8 = sadd.s32 3, %s1066_s4  ;;  %v311_v40 = vld [vmem:[#allocation10] sm:$0xff] (!%p625_p11) }
  0x62   : > { %s200_s7 = sld [smem:[#allocation6 + %s199_s8]]  ;;  %s210_s9 = sadd.s32 4, %s1066_s4 }
  0x63   : > { %s211_s11 = sld [smem:[#allocation6 + %s210_s9]]  ;;  %s221_s12 = sadd.s32 5, %s1066_s4 }
  0x64   : > { %s222_s13 = sld [smem:[#allocation6 + %s221_s12]]  ;;  %s232_s15 = sadd.s32 6, %s1066_s4 }
  0x65   : > { %s168_s16 = scalar_lea.vmem %s1054_s5, %s167_s14 [#allocation7]  ;;  %s233_s29 = sld [smem:[#allocation6 + %s232_s15]] }
  0x66   : > { %s179_s30 = scalar_lea.vmem %s1054_s5, %s178_s18 [#allocation7]  ;;  %s243_s3 = sadd.s32 7, %s1066_s4  ;;  %v169_v3 = vld [vmem:[%s168_s16] sm:$0x1] }
  0x67   : > { %v180_v4 = vld [vmem:[%s179_s30] sm:$0x1]  ;;  %s190_s17 = scalar_lea.vmem %s1054_s5, %s189_s6 [#allocation7]  ;;  %s244_s26 = sld [smem:[#allocation6 + %s243_s3]] }
  0x68   : > { %v191_v5 = vld [vmem:[%s190_s17] sm:$0x1]  ;;  %s201_s19 = scalar_lea.vmem %s1054_s5, %s200_s7 [#allocation7]  ;;  %v248_v6 = vrot.slane %v180_v4, 7 }
  0x69   : > { %v202_v7 = vld [vmem:[%s201_s19] sm:$0x1]  ;;  %s212_s8 = scalar_lea.vmem %s1054_s5, %s211_s11 [#allocation7]  ;;  %v251_v8 = vrot.slane %v191_v5, 6 }
  0x6a   : > { %v213_v9 = vld [vmem:[%s212_s8] sm:$0x1]  ;;  %s223_s14 = scalar_lea.vmem %s1054_s5, %s222_s13 [#allocation7]  ;;  %v254_v10 = vrot.slane %v202_v7, 5  ;;  %v269_v11 = vsel %vm268_vm2, %v169_v3, %v248_v6 }
  0x6b   : > { %v224_v12 = vld [vmem:[%s223_s14] sm:$0x1]  ;;  %s234_s18 = scalar_lea.vmem %s1054_s5, %s233_s29 [#allocation7]  ;;  %v257_v13 = vrot.slane %v213_v9, 4  ;;  %v271_v14 = vsel %vm270_vm3, %v269_v11, %v251_v8 }
  0x6c   : > { %v235_v15 = vld [vmem:[%s234_s18] sm:$0x1]  ;;  %v260_v16 = vrot.slane %v224_v12, 3  ;;  %v273_v17 = vsel %vm272_vm4, %v271_v14, %v254_v10 }
  0x6d   : > { %s245_s6 = scalar_lea.vmem %s1054_s5, %s244_s26 [#allocation7]  ;;  %v263_v18 = vrot.slane %v235_v15, 2  ;;  %v275_v19 = vsel %vm274_vm5, %v273_v17, %v257_v13 }
  0x6e   : > { %v246_v20 = vld [vmem:[%s245_s6] sm:$0x1]  ;;  %v277_v21 = vsel %vm276_vm6, %v275_v19, %v260_v16 }
  0x6f   : > { %v266_v22 = vrot.slane %v246_v20, 1  ;;  %v279_v23 = vsel %vm278_vm7, %v277_v21, %v263_v18 }
  0x71   : > { %v281_v24 = vsel %vm280_vm8, %v279_v23, %v266_v22 }
  0x72   : > { %283 = vmax.xlane.f32.xlu0 %v281_v24  ;;  %v312_v41 = vadd.f32 (!%p625_p11), %v311_v40, %v281_v24 }
  0x74   : > { %313 = vst [vmem:[#allocation10] sm:$0xff] (!%p625_p11), %v312_v41 }
  0xff   : > { %v284_v27 = vpop.xlane.xlu0 %283 }
 0x100   : > { %v285_v28 = vmax.f32 %v282_v26, %v284_v27 }
 0x102   : > { %v287_v29 = vsub.f32 %v282_v26, %v285_v28  ;;  %304 = vst.msk [vmem:[#allocation2] sm:$0xff] %vm302_vm9, %v285_v28  ;;  %293 = vperm.xlu0 %739, %v285_v28  }
 0x104   : > { %v288_v34 = vmul.f32 1.442695, %v287_v29 }
 0x181   : > { %v294_v30 = vpop.permute.xlu0 %293 }
 0x182   : > { %v296_v31 = vsub.f32 %v281_v24, %v294_v30 }
 0x184   : > { %v297_v32 = vmul.f32 1.442695, %v296_v31 }
 0x186   : > { %740 = vpow2.f32 %v297_v32 }
 0x187   : > { %742 = vpow2.f32 %v288_v34 }
 0x190   : > { %v741_v33 = vpop.eup %740 }
 0x191   : > { %299 = vadd.xlane.f32.xlu1 %v741_v33  ;;  %v743_v35 = vpop.eup %742 }
 0x192   : > { %v290_v37 = vmul.f32 %v743_v35, %v286_v36 }
 0x21b   : > { %307 = sbr.rel (%p625_p11) target bundleno = 546 (0x222), region = 40 }
 0x21e   : > { %v300_v38 = vpop.xlane.xlu1 %299 }
 0x21f   : > { %v301_v39 = vadd.f32 %v300_v38, %v290_v37 }
 0x221   : > { %303 = vst.msk [vmem:[#allocation3] sm:$0xff] %vm302_vm9, %v301_v39 }
 0x222 PF: > { %p314_p10 = scmp.eq.s32.totalorder %s876_s22, 1  ;;  %p635_p12 = scmp.ne.s32.totalorder %s876_s22, 1 }
 0x223   : > { %v321_v42 = vld [vmem:[#allocation10 + $0x8] sm:$0xff] (!%p635_p12) }
 0x224   : > { %317 = sbr.rel (%p635_p12) target bundleno = 555 (0x22b), region = 44  ;;  %v322_v43 = vadd.f32 (!%p635_p12), %v321_v42, %v281_v24 }
 0x226   : > { %323 = vst [vmem:[#allocation10 + $0x8] sm:$0xff] (!%p635_p12), %v322_v43 }
 0x22b PF: > { %s326_s26 = sadd.s32 8, %s1066_s4  ;;  %s337_s7 = sadd.s32 9, %s1066_s4  ;;  %744 = vset.pattern.permute.xlu0 %v902_v25  ;;  %v436_v2 = vld [vmem:[#allocation2 + $0x8] sm:$0xff]  ;;  %v441_v12 = vld [vmem:[#allocation3 + $0x8] sm:$0xff]  ;;  %v465_v16 = vld [vmem:[#allocation10 + $0x10] sm:$0xff] (!%p625_p11) }
 0x22c   : > { %s327_s9 = sld [smem:[#allocation6 + %s326_s26]]  ;;  %s348_s12 = sadd.s32 10, %s1066_s4 }
 0x22d   : > { %s338_s11 = sld [smem:[#allocation6 + %s337_s7]]  ;;  %s359_s13 = sadd.s32 11, %s1066_s4 }
 0x22e   : > { %s349_s15 = sld [smem:[#allocation6 + %s348_s12]]  ;;  %s370_s29 = sadd.s32 12, %s1066_s4 }
 0x22f   : > { %s360_s16 = sld [smem:[#allocation6 + %s359_s13]]  ;;  %s381_s30 = sadd.s32 13, %s1066_s4 }
 0x230   : > { %s371_s3 = sld [smem:[#allocation6 + %s370_s29]]  ;;  %s392_s19 = sadd.s32 14, %s1066_s4 }
 0x231   : > { %s382_s17 = sld [smem:[#allocation6 + %s381_s30]]  ;;  %s403_s8 = sadd.s32 15, %s1066_s4 }
 0x232   : > { %s328_s14 = scalar_lea.vmem %s1054_s5, %s327_s9 [#allocation7]  ;;  %s393_s6 = sld [smem:[#allocation6 + %s392_s19]] }
 0x233   : > { %s339_s18 = scalar_lea.vmem %s1054_s5, %s338_s11 [#allocation7]  ;;  %v329_v44 = vld [vmem:[%s328_s14] sm:$0x1]  ;;  %s404_s26 = sld [smem:[#allocation6 + %s403_s8]] }
 0x234   : > { %v340_v45 = vld [vmem:[%s339_s18] sm:$0x1]  ;;  %s350_s7 = scalar_lea.vmem %s1054_s5, %s349_s15 [#allocation7] }
 0x235   : > { %s361_s1 = scalar_lea.vmem %s1054_s5, %s360_s16 [#allocation7]  ;;  %v408_v46 = vrot.slane %v340_v45, 7  ;;  %v351_v47 = vld [vmem:[%s350_s7] sm:$0x1] }
 0x236   : > { %v362_v48 = vld [vmem:[%s361_s1] sm:$0x1]  ;;  %s372_s12 = scalar_lea.vmem %s1054_s5, %s371_s3 [#allocation7]  ;;  %v411_v49 = vrot.slane %v351_v47, 6 }
 0x237   : > { %s383_s13 = scalar_lea.vmem %s1054_s5, %s382_s17 [#allocation7]  ;;  %v414_v50 = vrot.slane %v362_v48, 5  ;;  %v428_v51 = vsel %vm268_vm2, %v329_v44, %v408_v46  ;;  %v373_v52 = vld [vmem:[%s372_s12] sm:$0x1] }
 0x238   : > { %v384_v53 = vld [vmem:[%s383_s13] sm:$0x1]  ;;  %v417_v54 = vrot.slane %v373_v52, 4  ;;  %v429_v56 = vsel %vm270_vm3, %v428_v51, %v411_v49  ;;  %s394_s4 = scalar_lea.vmem %s1054_s5, %s393_s6 [#allocation7] }
 0x239   : > { %v420_v55 = vrot.slane %v384_v53, 3  ;;  %s405_s9 = scalar_lea.vmem %s1054_s5, %s404_s26 [#allocation7]  ;;  %v430_v57 = vsel %vm272_vm4, %v429_v56, %v414_v50  ;;  %v395_v58 = vld [vmem:[%s394_s4] sm:$0x1] }
 0x23a   : > { %v406_v59 = vld [vmem:[%s405_s9] sm:$0x1]  ;;  %v431_v60 = vsel %vm274_vm5, %v430_v57, %v417_v54  ;;  %v423_v61 = vrot.slane %v395_v58, 2 }
 0x23b   : > { %v426_v62 = vrot.slane %v406_v59, 1  ;;  %v432_v63 = vsel %vm276_vm6, %v431_v60, %v420_v55 }
 0x23c   : > { %v433_v0 = vsel %vm278_vm7, %v432_v63, %v423_v61 }
 0x23d   : > { %v434_v1 = vsel %vm280_vm8, %v433_v0, %v426_v62 }
 0x23e   : > { %437 = vmax.xlane.f32.xlu0 %v434_v1  ;;  %v466_v17 = vadd.f32 (!%p625_p11), %v465_v16, %v434_v1 }
 0x240   : > { %467 = vst [vmem:[#allocation10 + $0x10] sm:$0xff] (!%p625_p11), %v466_v17 }
 0x2cb   : > { %v438_v3 = vpop.xlane.xlu0 %437 }
 0x2cc   : > { %v439_v4 = vmax.f32 %v436_v2, %v438_v3 }
 0x2ce   : > { %v442_v5 = vsub.f32 %v436_v2, %v439_v4  ;;  %458 = vst.msk [vmem:[#allocation2 + $0x8] sm:$0xff] %vm302_vm9, %v439_v4  ;;  %448 = vperm.xlu0 %744, %v439_v4  }
 0x2d0   : > { %v443_v10 = vmul.f32 1.442695, %v442_v5 }
 0x34d   : > { %v449_v6 = vpop.permute.xlu0 %448 }
 0x34e   : > { %v451_v7 = vsub.f32 %v434_v1, %v449_v6 }
 0x350   : > { %v452_v8 = vmul.f32 1.442695, %v451_v7 }
 0x352   : > { %745 = vpow2.f32 %v452_v8 }
 0x353   : > { %747 = vpow2.f32 %v443_v10 }
 0x35c   : > { %v746_v9 = vpop.eup %745 }
 0x35d   : > { %454 = vadd.xlane.f32.xlu1 %v746_v9  ;;  %v748_v11 = vpop.eup %747 }
 0x35e   : > { %v445_v13 = vmul.f32 %v748_v11, %v441_v12 }
 0x3e7   : > { %461 = sbr.rel (%p625_p11) target bundleno = 1006 (0x3ee), region = 48 }
 0x3ea   : > { %v455_v14 = vpop.xlane.xlu1 %454 }
 0x3eb   : > { %v456_v15 = vadd.f32 %v455_v14, %v445_v13 }
 0x3ed   : > { %457 = vst.msk [vmem:[#allocation3 + $0x8] sm:$0xff] %vm302_vm9, %v456_v15 }
 0x3ee PF: > { %470 = sbr.rel (%p635_p12) target bundleno = 1031 (0x407), region = 52  ;;  %v474_v18 = vld [vmem:[#allocation10 + $0x18] sm:$0xff] (!%p635_p12)  ;;  %v481_v20 = vld [vmem:[#allocation3] sm:$0xff] (!%p635_p12)  ;;  %v479_v23 = vld [vmem:[#allocation2] sm:$0xff] (!%p635_p12) }
 0x3ef   : > { %v475_v19 = vadd.f32 (!%p635_p12), %v474_v18, %v434_v1  ;;  %749 = vlog2.f32 (!%p635_p12), %v481_v20  ;;  %v480_v26 = vld [vmem:[#allocation2 + $0x8] sm:$0xff] (!%p635_p12)  ;;  %v477_v27 = vld [vmem:[#allocation4] sm:$0xff] (!%p635_p12) }
 0x3f0   : > { %v478_v30 = vld [vmem:[#allocation4 + $0x8] sm:$0xff] (!%p635_p12) }
 0x3f1   : > { %476 = vst [vmem:[#allocation10 + $0x18] sm:$0xff] (!%p635_p12), %v475_v19 }
 0x3f4   : > { %v482_v21 = vld [vmem:[#allocation3 + $0x8] sm:$0xff] (!%p635_p12) }
 0x3f5   : > { %751 = vlog2.f32 %v482_v21 }
 0x3f9   : > { %v750_v22 = vpop.eup %749 }
 0x3fa   : > { %v484_v25 = vmul.f32 0.6931472, %v750_v22 }
 0x3fc   : > { %v487_v29 = vadd.f32 %v484_v25, %v479_v23 }
 0x3fe   : > { %v489_v32 = vadd.f32 %v487_v29, %v477_v27 }
 0x3ff   : > { %v752_v24 = vpop.eup %751 }
 0x400   : > { %v486_v28 = vmul.f32 0.6931472, %v752_v24  ;;  %491 = vst.msk [vmem:[#allocation4] sm:$0xff] %vm302_vm9, %v489_v32 }
 0x402   : > { %v488_v31 = vadd.f32 %v486_v28, %v480_v26 }
 0x404   : > { %v490_v33 = vadd.f32 %v488_v31, %v478_v30 }
 0x406   : > { %492 = vst.msk [vmem:[#allocation4 + $0x8] sm:$0xff] %vm302_vm9, %v490_v33 }
 0x407 PF: > { %p493_p1 = scmp.eq.s32.totalorder %s880_s23, 3 }
 0x409   : > { %p494_p3 = pnand %p493_p1, %p314_p10 }
 0x40a   : > { %v498_v34 = vld [vmem:[#allocation4] sm:$0xff] (!%p494_p3)  ;;  %v903_v35 = vmov (!%p494_p3), 0   ;;  %v500_v37 = vld [vmem:[#allocation10] sm:$0xff] (!%p494_p3)  ;;  %v501_v38 = vld [vmem:[#allocation10 + $0x8] sm:$0xff] (!%p494_p3) }
 0x40b   : > { %497 = sbr.rel (%p494_p3) target bundleno = 1173 (0x495), region = 56  ;;  %753 = vset.pattern.permute.xlu0 (!%p494_p3), %v903_v35  ;;  %v502_v42 = vld [vmem:[#allocation10 + $0x10] sm:$0xff] (!%p494_p3)  ;;  %v503_v43 = vld [vmem:[#allocation10 + $0x18] sm:$0xff] (!%p494_p3) }
 0x40c   : > { %506 = vperm.xlu0 (!%p494_p3), %753, %v498_v34  }
 0x40d   : > { %v499_v36 = vld [vmem:[#allocation4 + $0x8] sm:$0xff] (!%p494_p3) }
 0x410   : > { %511 = vperm.xlu0 (!%p494_p3), %753, %v499_v36  }
 0x48b   : > { %v507_v39 = vpop.permute.xlu0 %506 }
 0x48c   : > { %v514_v40 = vsub.f32 %v507_v39, %v500_v37  ;;  %v515_v41 = vsub.f32 %v507_v39, %v501_v38 }
 0x48e   : > { %v518_v44 = vmul.f32 0.25, %v514_v40  ;;  %v519_v45 = vmul.f32 0.25, %v515_v41 }
 0x48f   : > { %v512_v46 = vpop.permute.xlu0 %511 }
 0x490   : > { %522 = vst [vmem:[#allocation10] sm:$0xff] %v518_v44  ;;  %523 = vst [vmem:[#allocation10 + $0x8] sm:$0xff] %v519_v45  ;;  %v516_v47 = vsub.f32 %v512_v46, %v502_v42  ;;  %v517_v48 = vsub.f32 %v512_v46, %v503_v43 }
 0x492   : > { %v520_v49 = vmul.f32 0.25, %v516_v47  ;;  %v521_v50 = vmul.f32 0.25, %v517_v48 }
 0x494   : > { %524 = vst [vmem:[#allocation10 + $0x10] sm:$0xff] %v520_v49  ;;  %525 = vst [vmem:[#allocation10 + $0x18] sm:$0xff] %v521_v50 }
 0x495 PF: > { %s1195_s1 = sadd.s32 4294967295, %s892_s0   ;;  %s904_s23 = smov [#allocation10]  }
 0x496   : > { %p1135_p5 = scmp.eq.s32.totalorder %s1195_s1, 7  ;;  %s532_s5 = sshll.u32 %s904_s23, 4  ;;  %s533_s5 = int_to_ptr.vmem [resolvable:$true] %s532_s5 }
 0x497   : > { %s794_s11 = scalar_lea.vmem %s533_s5, 512  ;;  %p801_p4 = scmp.lt.s32.totalorder %s533_s5, %s533_s5 }
 0x498   : > { %p795_p6 = scmp.ne.s32.totalorder %s533_s5, %s794_s11  ;;  %p802_p8 = scmp.lt.s32.totalorder %s794_s11, %s794_s11 }
 0x49a   : > { %p796_p7 = pnand %p795_p6, %p1135_p5  ;;  %p803_p0 = por %p802_p8, %p801_p4 }
 0x49c   : > { %p797_p2 = pneg %p796_p7 }
 0x49e   : > { %p804_p13 = pnand %p803_p0, %p797_p2 }
 0x4a0   : > { %807 = shalt.err (!%p804_p13)
}
 0x4a1   : > { %s808_s29 = scalar_lea.hbm %s1187_s2, 512 }
 0x4a2   : > { %p809_p9 = scmp.ne.s32.totalorder %s1187_s2, %s808_s29  ;;  %p814_p12 = scmp.lt.u32.totalorder %s808_s29, %s1187_s2 }
 0x4a4   : > { %p810_p11 = pnand %p809_p9, %p1135_p5 }
 0x4a6   : > { %p811_p10 = pneg %p810_p11 }
 0x4a8   : > { %p816_p1 = pnand %p814_p12, %p811_p10 }
 0x4aa   : > { %819 = shalt.err (!%p816_p1)
}
 0x4ab   : > { %s905_s8 = smov 256   ;;  %s906_s14 = smov 16  }
 0x4ac   : > { %653 = dma.vmem_to_hbm [thread:$0]  (%p1135_p5), %s533_s5, 512, %s1187_s2, [#allocation9], %s905_s8, %s905_s8, %s906_s14  }
 0x4ad   : > { %859 = dma.done.wait (%p1135_p5), [#allocation9], 512  }
 0x4ae   : > { %861 = vsyncadd (%p1135_p5), [#allocation9], 4294966784 }
 0x4af PF: > { %s20_s0 = sadd.s32 1, %s892_s0   ;;  %s1197_s19 = smov %s868_s20 }
 0x4b0   : > { %p17_p3 = scmp.ge.s32.totalorder %s20_s0, 10   ;;  %s1198_s20 = smov %s872_s21 }
 0x4b1   : > { %s1199_s21 = smov %s1003_s10  ;;  %s1200_s22 = smov %s884_s24 }
 0x4b2   : > { %s1201_s23 = smov %s888_s25  ;;  %s1202_s24 = smov %s1205_s27 }
 0x4b3   : > { %s1203_s25 = smov %s1209_s28  ;;  %19 = sbr.rel (!%p17_p3) target bundleno = 18 (0x12), region = 111 }
 0x4ba   :  { %548 = vsyncpa [#allocation8], 1 }
 0x4bb   :  { %550 = vsyncpa [#allocation8 + $0x1], 1 }
 0x4bc   :  { %551 = vsyncpa [#allocation9], 1 }
 0x4bd   :  { %553 = vsyncpa [#allocation9 + $0x1], 1 }

</bundles_post_ra>
